<compile_context>
chip_gen: v7x
topology: tpu7x:2x2x1
jax: 0.10.0
libtpu: 0.0.40
codegen_flags: <defaults>
</compile_context>

<pallas_src>
import functools

import jax
import jax.numpy as jnp
from jax import lax
from jax.experimental import pallas as pl
from jax.experimental.pallas import tpu as pltpu


def _round_up(a, b):
    return (a + b - 1) // b * b


def _cdiv(a, b):
    return -(-a // b)


def _conformer_conv_kernel(*refs, channels, kernel_size, batch, n_rows, tile_rows,
                           halo_rows, use_halo):
    C = channels
    K = kernel_size
    B = batch
    N = n_rows
    tN = tile_rows
    Hr = halo_rows
    pad = (K - 1) // 2

    if use_halo:
        (x_ref, xp_ref, xn_ref, w1_ref, b1_ref, wd_ref, bd_ref, w2_ref, b2_ref,
         o_ref) = refs
    else:
        (x_ref, w1_ref, b1_ref, wd_ref, bd_ref, w2_ref, b2_ref, o_ref) = refs
        xp_ref = xn_ref = None

    w1 = w1_ref[...]                                  # (C, 2C)  bf16
    w2 = w2_ref[...]                                  # (C, C)   bf16
    b1 = b1_ref[...].astype(jnp.float32)              # (1, 2C)
    b2 = b2_ref[...].astype(jnp.float32)              # (1, C)
    wd = wd_ref[...].astype(jnp.float32)              # (K, C)
    bd = bd_ref[...].astype(jnp.float32)              # (1, C)

    def pw1_glu(x_rows):
        # pointwise_conv1 (1x1 conv == matmul; bf16 MXU, f32 accumulate) + GLU over channels.
        y = jnp.dot(x_rows.astype(jnp.bfloat16), w1,
                    preferred_element_type=jnp.float32) + b1
        return y[:, :C] * jax.nn.sigmoid(y[:, C:])

    glu_cur = pw1_glu(x_ref[...])                      # (tN, C) f32

    if use_halo:
        # GLU recomputed only on the small halo blocks (Hr rows each side).
        glu_prev = pw1_glu(xp_ref[...])                # rows [i*tN - Hr, i*tN)
        glu_next = pw1_glu(xn_ref[...])                # rows [(i+1)*tN, (i+1)*tN + Hr)
        if Hr < tN:
            zpad = jnp.zeros((tN - Hr, C), jnp.float32)
            glu_prev = jnp.concatenate([glu_prev, zpad], axis=0)
            glu_next = jnp.concatenate([glu_next, zpad], axis=0)

    i = pl.program_id(0)
    r_idx = lax.broadcasted_iota(jnp.int32, (tN, 1), 0)   # row index within the tile
    g_idx = i * tN + r_idx                                # global flat row index

    def roll0(a, s):
        s = s % tN
        return a if s == 0 else pltpu.roll(a, shift=s, axis=0)

    # Depthwise conv: tap offset of d time steps == d*B flat rows (same batch lane).
    acc = jnp.zeros((tN, C), jnp.float32)
    for k in range(K):                                    # K is small & static -> unrolled
        d = (k - pad) * B
        if d == 0:
            src = glu_cur
        elif d < 0:
            m = -d
            src = roll0(glu_cur, m)
            if use_halo:
                src = jnp.where(r_idx < m, roll0(glu_prev, m - Hr), src)
        else:
            m = d
            src = roll0(glu_cur, -m)
            if use_halo:
                src = jnp.where(r_idx >= tN - m, roll0(glu_next, -m), src)
        tgt = g_idx + d
        # Zero the conv "same" padding region and any tile-tail / wrapped rows.
        src = jnp.where((tgt >= 0) & (tgt < N), src, 0.0)
        acc = acc + src * wd[k:k + 1, :]

    h = jnp.maximum(acc + bd, 0.0)                        # ReLU activation

    # pointwise_conv2 (1x1 conv == matmul)
    out = jnp.dot(h.astype(jnp.bfloat16), w2, preferred_element_type=jnp.float32) + b2
    o_ref[...] = out.astype(o_ref.dtype)


def conformer_conv_block(x_tbc, w1, b1, wd, bd, w2, b2, kernel_size, *, base_rows=512):
    """x_tbc: [T, B, C] float32.  Weights in matmul layout (mapping from the PyTorch module):
         w1 = pointwise_conv1.weight[:, :, 0].T  -> (C, 2C),  b1 -> (1, 2C)
         wd = depthwise_conv.weight[:, 0, :].T   -> (K, C),   bd -> (1, C)
         w2 = pointwise_conv2.weight[:, :, 0].T  -> (C, C),   b2 -> (1, C)
       Returns [T, B, C]."""
    T, B, C = x_tbc.shape
    K = kernel_size
    assert (K - 1) % 2 == 0, "only odd kernel_size gives 'same' padding (as in the module)"
    pad = (K - 1) // 2
    N = T * B

    # Free, layout-preserving reshape: [T, B, C] -> [T*B, C].  No HBM transpose passes.
    x2d = x_tbc.reshape(N, C)

    # Row tiling.  Hr = halo rows needed by the depthwise conv (pad time steps * B rows),
    # rounded to a sublane multiple; the tile is a multiple of Hr so halo blocks can use
    # plain Blocked index maps (clamped at the ends, out-of-range rows are masked in-kernel).
    Hr = _round_up(max(pad * B, 1), 8)
    tN = _round_up(max(base_rows, Hr), Hr)
    if tN >= N:
        tN, n_tiles, use_halo = N, 1, False
    else:
        n_tiles, use_halo = _cdiv(N, tN), True

    # bf16 weights for the MXU (halves their DMA / VMEM); biases & depthwise taps stay f32.
    w1b = jnp.asarray(w1, jnp.float32).astype(jnp.bfloat16)
    w2b = jnp.asarray(w2, jnp.float32).astype(jnp.bfloat16)
    b1r = jnp.asarray(b1, jnp.float32).reshape(1, 2 * C)
    bdr = jnp.asarray(bd, jnp.float32).reshape(1, C)
    b2r = jnp.asarray(b2, jnp.float32).reshape(1, C)
    wdr = jnp.asarray(wd, jnp.float32).reshape(K, C)

    in_specs = [pl.BlockSpec((tN, C), lambda i: (i, 0))]
    operands = [x2d]
    if use_halo:
        nb = tN // Hr
        n_hblocks = _cdiv(N, Hr)
        in_specs += [
            pl.BlockSpec((Hr, C), lambda i: (jnp.maximum(i * nb - 1, 0), 0)),
            pl.BlockSpec((Hr, C), lambda i: (jnp.minimum((i + 1) * nb, n_hblocks - 1), 0)),
        ]
        operands += [x2d, x2d]
    in_specs += [
        pl.BlockSpec((C, 2 * C), lambda i: (0, 0)),   # W1 (bf16)
        pl.BlockSpec((1, 2 * C), lambda i: (0, 0)),   # b1
        pl.BlockSpec((K, C), lambda i: (0, 0)),       # Wd
        pl.BlockSpec((1, C), lambda i: (0, 0)),       # bd
        pl.BlockSpec((C, C), lambda i: (0, 0)),       # W2 (bf16)
        pl.BlockSpec((1, C), lambda i: (0, 0)),       # b2
    ]
    operands += [w1b, b1r, wdr, bdr, w2b, b2r]

    kernel = functools.partial(
        _conformer_conv_kernel, channels=C, kernel_size=K, batch=B, n_rows=N,
        tile_rows=tN, halo_rows=Hr, use_halo=use_halo)

    # Explicit VMEM budget: double-buffered I/O blocks + weights + f32 intermediates with
    # headroom, capped at 64 MiB so it also fits v7x's smaller physical VMEM.
    blk_bytes = tN * C * 4
    halo_blk_bytes = 2 * Hr * C * 4 if use_halo else 0
    w_bytes = (C * 2 * C + C * C) * 2 + (K + 3) * C * 4
    vmem_est = 2 * (2 * blk_bytes + halo_blk_bytes + w_bytes) + 8 * blk_bytes
    vmem_limit = int(min(64 * 1024 * 1024, max(16 * 1024 * 1024, 2 * vmem_est)))

    cost = pl.CostEstimate(
        flops=int(2 * N * C * (2 * C) + 2 * N * K * C + 2 * N * C * C),
        transcendentals=int(N * C),                       # sigmoid inside the GLU
        bytes_accessed=int(2 * N * C * 4 + n_tiles * (halo_blk_bytes + w_bytes)),
    )

    out2d = pl.pallas_call(
        kernel,
        out_shape=jax.ShapeDtypeStruct((N, C), x_tbc.dtype),
        grid=(n_tiles,),
        in_specs=in_specs,
        out_specs=pl.BlockSpec((tN, C), lambda i: (i, 0)),
        compiler_params=pltpu.CompilerParams(
            dimension_semantics=("parallel",),
            vmem_limit_bytes=vmem_limit),
        cost_estimate=cost,
    )(*operands)

    return out2d.reshape(T, B, C)                         # free reshape back to [T, B, C]


def reference(x_tbc, w1, b1, wd, bd, w2, b2, kernel_size, mxu_dtype=None):
    """Plain-JAX reference replicating the PyTorch module semantics.
    If mxu_dtype is given, matmul operands are rounded to it (to mirror the kernel's
    bf16-fed MXU with f32 accumulation)."""
    T, B, C = x_tbc.shape
    K = kernel_size
    pad = (K - 1) // 2

    def mm(a, w):
        if mxu_dtype is not None:
            a = a.astype(mxu_dtype).astype(jnp.float32)
            w = w.astype(mxu_dtype).astype(jnp.float32)
        return jnp.dot(a, w, preferred_element_type=jnp.float32)

    y = mm(x_tbc, w1) + b1.reshape(1, 1, 2 * C)            # [T, B, 2C]
    glu = y[..., :C] * jax.nn.sigmoid(y[..., C:])
    padded = jnp.pad(glu, ((pad, pad), (0, 0), (0, 0)))
    dw = bd.reshape(1, 1, C) + sum(
        padded[k:k + T] * wd[k].reshape(1, 1, C) for k in range(K))
    h = jnp.maximum(dw, 0.0)
    return mm(h, w2) + b2.reshape(1, 1, C)


if __name__ == "__main__":
    def make_inputs(key, T, B, C, K):
        k_x, k_w1, k_wd, k_w2 = jax.random.split(key, 4)
        x = jax.random.normal(k_x, (T, B, C), dtype=jnp.float32)
        # Kaiming-normal-style init (std = sqrt(2 / fan_in)), zero biases, matching the
        # parameter shapes of the PyTorch module (see layout mapping in the wrapper doc).
        w1 = jax.random.normal(k_w1, (C, 2 * C), jnp.float32) * jnp.sqrt(2.0 / C)
        wd = jax.random.normal(k_wd, (K, C), jnp.float32) * jnp.sqrt(2.0 / K)
        w2 = jax.random.normal(k_w2, (C, C), jnp.float32) * jnp.sqrt(2.0 / C)
        b1 = jnp.zeros((1, 2 * C), jnp.float32)
        bd = jnp.zeros((1, C), jnp.float32)
        b2 = jnp.zeros((1, C), jnp.float32)
        return x, w1, b1, wd, bd, w2, b2

    key = jax.random.PRNGKey(0)
    k_small, k_big = jax.random.split(key)

    # Small single-tile case: [seq_len, batch, hidden] = [8, 2, 32], kernel_size = 3.
    T, B, C, K = 8, 2, 32, 3
    args = make_inputs(k_small, T, B, C, K)
    out = jax.block_until_ready(conformer_conv_block(*args, K))
    assert out.shape == (T, B, C)
    ref_bf16 = reference(*args, K, mxu_dtype=jnp.bfloat16)   # matches kernel's bf16 MXU feed
    ref_f32 = reference(*args, K)
    assert jnp.allclose(out, ref_bf16, atol=1e-2, rtol=1e-2)
    assert jnp.allclose(out, ref_f32, atol=2e-1, rtol=2e-1)

    # Larger case exercising row tiling + cross-tile depthwise halo (2 tiles of 512 rows).
    T, B, C, K = 160, 4, 128, 7
    args = make_inputs(k_big, T, B, C, K)
    out = jax.block_until_ready(conformer_conv_block(*args, K))
    assert out.shape == (T, B, C)
    ref_bf16 = reference(*args, K, mxu_dtype=jnp.bfloat16)
    ref_f32 = reference(*args, K)
    assert jnp.allclose(out, ref_bf16, atol=1e-2, rtol=1e-2)
    assert jnp.allclose(out, ref_f32, atol=2e-1, rtol=2e-1)

    print("KERNEL_OK")
</pallas_src>

<mosaic_0001>
module attributes {stable_mosaic.version = 11 : i64} {
  func.func @_conformer_conv_kernel(%arg0: i32, %arg1: memref<16x32xf32, #tpu.memory_space<vmem>>, %arg2: memref<32x64xbf16, #tpu.memory_space<vmem>>, %arg3: memref<1x64xf32, #tpu.memory_space<vmem>>, %arg4: memref<3x32xf32, #tpu.memory_space<vmem>>, %arg5: memref<1x32xf32, #tpu.memory_space<vmem>>, %arg6: memref<32x32xbf16, #tpu.memory_space<vmem>>, %arg7: memref<1x32xf32, #tpu.memory_space<vmem>>, %arg8: memref<16x32xf32, #tpu.memory_space<vmem>>) attributes {dimension_semantics = [#tpu.dimension_semantics<parallel>], iteration_bounds = array<i64: 1>, scalar_prefetch = 0 : i64, scratch_operands = 0 : i64, tpu.core_type = #tpu.core_type<tc>, window_params = [{transform_indices = @transform_0, window_bounds = array<i64: 16, 32>}, {pipeline_mode = #tpu.pipeline_mode<synchronous>, transform_indices = @transform_1, window_bounds = array<i64: 32, 64>}, {pipeline_mode = #tpu.pipeline_mode<synchronous>, transform_indices = @transform_2, window_bounds = array<i64: 1, 64>}, {pipeline_mode = #tpu.pipeline_mode<synchronous>, transform_indices = @transform_3, window_bounds = array<i64: 3, 32>}, {pipeline_mode = #tpu.pipeline_mode<synchronous>, transform_indices = @transform_4, window_bounds = array<i64: 1, 32>}, {pipeline_mode = #tpu.pipeline_mode<synchronous>, transform_indices = @transform_5, window_bounds = array<i64: 32, 32>}, {pipeline_mode = #tpu.pipeline_mode<synchronous>, transform_indices = @transform_6, window_bounds = array<i64: 1, 32>}, {transform_indices = @transform_7, window_bounds = array<i64: 16, 32>}]} {
    %c0 = arith.constant 0 : index
    %c0_0 = arith.constant 0 : index
    %0 = vector.load %arg2[%c0, %c0_0] : memref<32x64xbf16, #tpu.memory_space<vmem>>, vector<32x64xbf16>
    %c0_1 = arith.constant 0 : index
    %c0_2 = arith.constant 0 : index
    %1 = vector.load %arg6[%c0_1, %c0_2] : memref<32x32xbf16, #tpu.memory_space<vmem>>, vector<32x32xbf16>
    %c0_3 = arith.constant 0 : index
    %c0_4 = arith.constant 0 : index
    %2 = vector.load %arg3[%c0_3, %c0_4] : memref<1x64xf32, #tpu.memory_space<vmem>>, vector<1x64xf32>
    %c0_5 = arith.constant 0 : index
    %c0_6 = arith.constant 0 : index
    %3 = vector.load %arg7[%c0_5, %c0_6] : memref<1x32xf32, #tpu.memory_space<vmem>>, vector<1x32xf32>
    %c0_7 = arith.constant 0 : index
    %c0_8 = arith.constant 0 : index
    %4 = vector.load %arg4[%c0_7, %c0_8] : memref<3x32xf32, #tpu.memory_space<vmem>>, vector<3x32xf32>
    %c0_9 = arith.constant 0 : index
    %c0_10 = arith.constant 0 : index
    %5 = vector.load %arg5[%c0_9, %c0_10] : memref<1x32xf32, #tpu.memory_space<vmem>>, vector<1x32xf32>
    %c0_11 = arith.constant 0 : index
    %c0_12 = arith.constant 0 : index
    %6 = vector.load %arg1[%c0_11, %c0_12] : memref<16x32xf32, #tpu.memory_space<vmem>>, vector<16x32xf32>
    %7 = arith.truncf %6 : vector<16x32xf32> to vector<16x32xbf16>
    %cst = arith.constant dense<0.000000e+00> : vector<16x64xf32>
    %8 = tpu.matmul %7, %0, %cst {dimension_numbers = #tpu.dot_dimension_numbers<[1], [0], [0], [1], [0, 0, 1, 1], [], []>} : vector<16x32xbf16>, vector<32x64xbf16>, vector<16x64xf32> -> vector<16x64xf32>
    %9 = vector.broadcast %2 : vector<1x64xf32> to vector<16x64xf32>
    %10 = arith.addf %8, %9 : vector<16x64xf32>
    %11 = vector.extract_strided_slice %10 {offsets = [0, 0], sizes = [16, 32], strides = [1, 1]} : vector<16x64xf32> to vector<16x32xf32>
    %12 = vector.extract_strided_slice %10 {offsets = [0, 32], sizes = [16, 32], strides = [1, 1]} : vector<16x64xf32> to vector<16x32xf32>
    %13 = arith.negf %12 : vector<16x32xf32>
    %14 = math.exp %13 : vector<16x32xf32>
    %cst_13 = arith.constant 1.000000e+00 : f32
    %15 = vector.broadcast %cst_13 : f32 to vector<16x32xf32>
    %16 = arith.addf %15, %14 : vector<16x32xf32>
    %17 = arith.divf %15, %16 : vector<16x32xf32>
    %18 = arith.mulf %11, %17 : vector<16x32xf32>
    %19 = tpu.iota {dimensions = array<i32: 0>} : vector<16x1xi32>
    %c16_i32 = arith.constant 16 : i32
    %20 = arith.muli %arg0, %c16_i32 : i32
    %21 = vector.broadcast %20 : i32 to vector<16x1xi32>
    %22 = arith.addi %21, %19 : vector<16x1xi32>
    %cst_14 = arith.constant 0.000000e+00 : f32
    %23 = vector.broadcast %cst_14 : f32 to vector<16x32xf32>
    %c2_i32 = arith.constant 2 : i32
    %24 = tpu.dynamic_rotate %18 by %c2_i32 dim 0 : vector<16x32xf32>, i32 -> vector<16x32xf32>
    %c-2_i32 = arith.constant -2 : i32
    %25 = vector.broadcast %c-2_i32 : i32 to vector<16x1xi32>
    %26 = arith.addi %22, %25 : vector<16x1xi32>
    %c0_i32 = arith.constant 0 : i32
    %27 = vector.broadcast %c0_i32 : i32 to vector<16x1xi32>
    %28 = arith.cmpi sge, %26, %27 : vector<16x1xi32>
    %c16_i32_15 = arith.constant 16 : i32
    %29 = vector.broadcast %c16_i32_15 : i32 to vector<16x1xi32>
    %30 = arith.cmpi slt, %26, %29 : vector<16x1xi32>
    %31 = arith.andi %28, %30 : vector<16x1xi1>
    %cst_16 = arith.constant 0.000000e+00 : f32
    %32 = vector.shape_cast %31 : vector<16x1xi1> to vector<16x1xi1>
    %33 = vector.broadcast %32 : vector<16x1xi1> to vector<16x32xi1>
    %34 = vector.broadcast %cst_16 : f32 to vector<16x32xf32>
    %35 = arith.select %33, %24, %34 : vector<16x32xi1>, vector<16x32xf32>
    %36 = vector.extract_strided_slice %4 {offsets = [0, 0], sizes = [1, 32], strides = [1, 1]} : vector<3x32xf32> to vector<1x32xf32>
    %37 = vector.broadcast %36 : vector<1x32xf32> to vector<16x32xf32>
    %38 = arith.mulf %35, %37 : vector<16x32xf32>
    %39 = arith.addf %23, %38 : vector<16x32xf32>
    %c0_i32_17 = arith.constant 0 : i32
    %40 = vector.broadcast %c0_i32_17 : i32 to vector<16x1xi32>
    %41 = arith.addi %22, %40 : vector<16x1xi32>
    %c0_i32_18 = arith.constant 0 : i32
    %42 = vector.broadcast %c0_i32_18 : i32 to vector<16x1xi32>
    %43 = arith.cmpi sge, %41, %42 : vector<16x1xi32>
    %c16_i32_19 = arith.constant 16 : i32
    %44 = vector.broadcast %c16_i32_19 : i32 to vector<16x1xi32>
    %45 = arith.cmpi slt, %41, %44 : vector<16x1xi32>
    %46 = arith.andi %43, %45 : vector<16x1xi1>
    %cst_20 = arith.constant 0.000000e+00 : f32
    %47 = vector.shape_cast %46 : vector<16x1xi1> to vector<16x1xi1>
    %48 = vector.broadcast %47 : vector<16x1xi1> to vector<16x32xi1>
    %49 = vector.broadcast %cst_20 : f32 to vector<16x32xf32>
    %50 = arith.select %48, %18, %49 : vector<16x32xi1>, vector<16x32xf32>
    %51 = vector.extract_strided_slice %4 {offsets = [1, 0], sizes = [1, 32], strides = [1, 1]} : vector<3x32xf32> to vector<1x32xf32>
    %52 = vector.broadcast %51 : vector<1x32xf32> to vector<16x32xf32>
    %53 = arith.mulf %50, %52 : vector<16x32xf32>
    %54 = arith.addf %39, %53 : vector<16x32xf32>
    %c14_i32 = arith.constant 14 : i32
    %55 = tpu.dynamic_rotate %18 by %c14_i32 dim 0 : vector<16x32xf32>, i32 -> vector<16x32xf32>
    %c2_i32_21 = arith.constant 2 : i32
    %56 = vector.broadcast %c2_i32_21 : i32 to vector<16x1xi32>
    %57 = arith.addi %22, %56 : vector<16x1xi32>
    %c0_i32_22 = arith.constant 0 : i32
    %58 = vector.broadcast %c0_i32_22 : i32 to vector<16x1xi32>
    %59 = arith.cmpi sge, %57, %58 : vector<16x1xi32>
    %c16_i32_23 = arith.constant 16 : i32
    %60 = vector.broadcast %c16_i32_23 : i32 to vector<16x1xi32>
    %61 = arith.cmpi slt, %57, %60 : vector<16x1xi32>
    %62 = arith.andi %59, %61 : vector<16x1xi1>
    %cst_24 = arith.constant 0.000000e+00 : f32
    %63 = vector.shape_cast %62 : vector<16x1xi1> to vector<16x1xi1>
    %64 = vector.broadcast %63 : vector<16x1xi1> to vector<16x32xi1>
    %65 = vector.broadcast %cst_24 : f32 to vector<16x32xf32>
    %66 = arith.select %64, %55, %65 : vector<16x32xi1>, vector<16x32xf32>
    %67 = vector.extract_strided_slice %4 {offsets = [2, 0], sizes = [1, 32], strides = [1, 1]} : vector<3x32xf32> to vector<1x32xf32>
    %68 = vector.broadcast %67 : vector<1x32xf32> to vector<16x32xf32>
    %69 = arith.mulf %66, %68 : vector<16x32xf32>
    %70 = arith.addf %54, %69 : vector<16x32xf32>
    %71 = vector.broadcast %5 : vector<1x32xf32> to vector<16x32xf32>
    %72 = arith.addf %70, %71 : vector<16x32xf32>
    %cst_25 = arith.constant 0.000000e+00 : f32
    %73 = vector.broadcast %cst_25 : f32 to vector<16x32xf32>
    %74 = arith.maximumf %72, %73 : vector<16x32xf32>
    %75 = arith.truncf %74 : vector<16x32xf32> to vector<16x32xbf16>
    %cst_26 = arith.constant dense<0.000000e+00> : vector<16x32xf32>
    %76 = tpu.matmul %75, %1, %cst_26 {dimension_numbers = #tpu.dot_dimension_numbers<[1], [0], [0], [1], [0, 0, 1, 1], [], []>} : vector<16x32xbf16>, vector<32x32xbf16>, vector<16x32xf32> -> vector<16x32xf32>
    %77 = vector.broadcast %3 : vector<1x32xf32> to vector<16x32xf32>
    %78 = arith.addf %76, %77 : vector<16x32xf32>
    %c0_27 = arith.constant 0 : index
    %c0_28 = arith.constant 0 : index
    %79 = vector.load %arg8[%c0_27, %c0_28] : memref<16x32xf32, #tpu.memory_space<vmem>>, vector<16x32xf32>
    tpu.vector_store %arg8[%c0_27, %c0_28], %78 {strides = array<i32>} : memref<16x32xf32, #tpu.memory_space<vmem>>, vector<16x32xf32>,
    return
  }
  func.func @transform_0(%arg0: i32) -> (i32, i32) {
    %c0_i32 = arith.constant 0 : i32
    %c0_i32_0 = arith.constant 0 : i32
    return %arg0, %c0_i32 : i32, i32
  }
  func.func @transform_1(%arg0: i32) -> (i32, i32) {
    %c0_i32 = arith.constant 0 : i32
    %c0_i32_0 = arith.constant 0 : i32
    %c0_i32_1 = arith.constant 0 : i32
    return %c0_i32, %c0_i32_0 : i32, i32
  }
  func.func @transform_2(%arg0: i32) -> (i32, i32) {
    %c0_i32 = arith.constant 0 : i32
    %c0_i32_0 = arith.constant 0 : i32
    %c0_i32_1 = arith.constant 0 : i32
    return %c0_i32, %c0_i32_0 : i32, i32
  }
  func.func @transform_3(%arg0: i32) -> (i32, i32) {
    %c0_i32 = arith.constant 0 : i32
    %c0_i32_0 = arith.constant 0 : i32
    %c0_i32_1 = arith.constant 0 : i32
    return %c0_i32, %c0_i32_0 : i32, i32
  }
  func.func @transform_4(%arg0: i32) -> (i32, i32) {
    %c0_i32 = arith.constant 0 : i32
    %c0_i32_0 = arith.constant 0 : i32
    %c0_i32_1 = arith.constant 0 : i32
    return %c0_i32, %c0_i32_0 : i32, i32
  }
  func.func @transform_5(%arg0: i32) -> (i32, i32) {
    %c0_i32 = arith.constant 0 : i32
    %c0_i32_0 = arith.constant 0 : i32
    %c0_i32_1 = arith.constant 0 : i32
    return %c0_i32, %c0_i32_0 : i32, i32
  }
  func.func @transform_6(%arg0: i32) -> (i32, i32) {
    %c0_i32 = arith.constant 0 : i32
    %c0_i32_0 = arith.constant 0 : i32
    %c0_i32_1 = arith.constant 0 : i32
    return %c0_i32, %c0_i32_0 : i32, i32
  }
  func.func @transform_7(%arg0: i32) -> (i32, i32) {
    %c0_i32 = arith.constant 0 : i32
    %c0_i32_0 = arith.constant 0 : i32
    return %arg0, %c0_i32 : i32, i32
  }
}

</mosaic_0001>

<bundles_post_ra>
// kernel: tpu_custom_call.1
= control target key start
LH: loop header
LB: loop body
LE: loop exit
PB: predicated region body
PF: predicated region fallthrough
CT: control target
= control target key end

     0   :  { %12 = vsyncpa [#allocation3], 0  ;;  %s615_s0 = inlined_call_operand.hbm [shape: f32[16,32], index: 0, kind: input, shape index: {}]   ;;  %s616_s1 = inlined_call_operand.hbm [shape: bf16[32,64], index: 1, kind: input, shape index: {}]   ;;  %s617_s2 = inlined_call_operand.vmem [shape: f32[1,64], index: 2, kind: input, shape index: {}]   ;;  %s618_s3 = inlined_call_operand.hbm [shape: f32[3,32], index: 3, kind: input, shape index: {}]   ;;  %s619_s4 = inlined_call_operand.vmem [shape: f32[1,32], index: 4, kind: input, shape index: {}]   ;;  %s620_s5 = inlined_call_operand.vmem [shape: bf16[32,32], index: 5, kind: input, shape index: {}]   ;;  %s621_s6 = inlined_call_operand.vmem [shape: f32[1,32], index: 6, kind: input, shape index: {}]   ;;  %s622_s7 = inlined_call_operand.hbm [shape: f32[16,32], index: 7, kind: output, shape index: {}]  }
   0x1   :  { %13 = vsyncpa [#allocation6], 0 }
   0x2   :  { %14 = vsyncpa [#allocation4], 0  ;;  %s491_s24 = smov [#allocation5]   ;;  %s397_s28 = scalar_lea.hbm %s616_s1, 256 }
   0x3   :  { %s32_s25 = sshll.u32 %s491_s24, 4  ;;  %p398_p0 = scmp.ne.s32.totalorder %s616_s1, %s397_s28  ;;  %s33_s25 = int_to_ptr.vmem [resolvable:$true] %s32_s25 }
   0x4   :  { %p401_p1 = scmp.lt.u32.totalorder %s397_s28, %s616_s1 }
   0x6   :  { %p403_p2 = pnand %p401_p1, %p398_p0 }
   0x8   :  { %406 = shalt.err (!%p403_p2)
}
   0x9   :  { %s407_s10 = scalar_lea.vmem %s33_s25, 256  ;;  %p412_p4 = scmp.lt.s32.totalorder %s33_s25, %s33_s25 }
   0xa   :  { %p408_p3 = scmp.ne.s32.totalorder %s33_s25, %s407_s10  ;;  %p413_p5 = scmp.lt.s32.totalorder %s407_s10, %s407_s10 }
   0xc   :  { %p414_p6 = por %p413_p5, %p412_p4 }
   0xe   :  { %p415_p7 = pnand %p414_p6, %p408_p3 }
  0x10   :  { %418 = shalt.err (!%p415_p7)
}
  0x11   :  { %s492_s11 = smov 64   ;;  %s493_s12 = smov 4  }
  0x12   :  { %38 = dma.hbm_to_vmem [thread:$0]  %s616_s1, 256, %s33_s25, [#allocation6], %s492_s11, %s492_s11, %s493_s12  }
  0x13   :  { %s494_s15 = smov [#allocation2]   ;;  %s419_s19 = scalar_lea.hbm %s615_s0, 256 }
  0x14   :  { %s20_s16 = sshll.u32 %s494_s15, 4  ;;  %p420_p8 = scmp.ne.s32.totalorder %s615_s0, %s419_s19  ;;  %s21_s16 = int_to_ptr.vmem [resolvable:$true] %s20_s16 }
  0x15   :  { %p423_p9 = scmp.lt.u32.totalorder %s419_s19, %s615_s0 }
  0x17   :  { %p425_p10 = pnand %p423_p9, %p420_p8 }
  0x19   :  { %428 = shalt.err (!%p425_p10)
}
  0x1a   :  { %s429_s24 = scalar_lea.vmem %s21_s16, 256  ;;  %p434_p12 = scmp.lt.s32.totalorder %s21_s16, %s21_s16 }
  0x1b   :  { %p430_p11 = scmp.ne.s32.totalorder %s21_s16, %s429_s24  ;;  %p435_p13 = scmp.lt.s32.totalorder %s429_s24, %s429_s24 }
  0x1d   :  { %p436_p0 = por %p435_p13, %p434_p12 }
  0x1f   :  { %p437_p1 = pnand %p436_p0, %p430_p11 }
  0x21   :  { %440 = shalt.err (!%p437_p1)
}
  0x22   :  { %s495_s1 = smov 128   ;;  %s496_s25 = smov 8  }
  0x23   :  { %26 = dma.hbm_to_vmem [thread:$0]  %s615_s0, 256, %s21_s16, [#allocation3], %s495_s1, %s495_s1, %s496_s25  }
  0x24   :  { %s497_s28 = smov [#allocation7]   ;;  %s441_s9 = scalar_lea.hbm %s618_s3, 64 }
  0x25   :  { %s47_s29 = sshll.u32 %s497_s28, 4  ;;  %p442_p2 = scmp.ne.s32.totalorder %s618_s3, %s441_s9  ;;  %s48_s29 = int_to_ptr.vmem [resolvable:$true] %s47_s29 }
  0x26   :  { %p445_p3 = scmp.lt.u32.totalorder %s441_s9, %s618_s3 }
  0x28   :  { %p447_p4 = pnand %p445_p3, %p442_p2 }
  0x2a   :  { %450 = shalt.err (!%p447_p4)
}
  0x2b   :  { %s451_s14 = scalar_lea.vmem %s48_s29, 64  ;;  %p456_p6 = scmp.lt.s32.totalorder %s48_s29, %s48_s29 }
  0x2c   :  { %p452_p5 = scmp.ne.s32.totalorder %s48_s29, %s451_s14  ;;  %p457_p7 = scmp.lt.s32.totalorder %s451_s14, %s451_s14 }
  0x2e   :  { %p458_p8 = por %p457_p7, %p456_p6 }
  0x30   :  { %p459_p9 = pnand %p458_p8, %p452_p5 }
  0x32   :  { %462 = shalt.err (!%p459_p9)
}
  0x33   :  { %50 = dma.hbm_to_vmem [thread:$0]  %s618_s3, 64, %s48_s29, [#allocation6]  }
  0x34   :  { %485 = dma.done.wait [#allocation3], 256  }
  0x35   :  { %486 = vsyncadd [#allocation3], 4294967040 }
  0x36   :  { %487 = dma.done.wait [#allocation6], 320  }
  0x37   :  { %488 = vsyncadd [#allocation6], 4294966976  ;;  %v498_v0 = vmov 0.0   ;;  %vm499_vm0 = vmmov 0   ;;  %v385_v1 = vld [vmem:[#allocation5] sm:$0xff]   ;;  %v386_v2 = vld [vmem:[#allocation5 + $0x8] sm:$0xff]   ;;  %v167_v23 = vlaneseq }
  0x38   :  { %358 = vmatprep.subr.bf16.mxu0 %v498_v0  ;;  %362 = vmatprep.mubr.msk.bf16.mxu0 %vm499_vm0, %v498_v0  ;;  %v79_v3 = vld [vmem:[#allocation2] sm:$0xff]  ;;  %v80_v4 = vld [vmem:[#allocation2 + $0x8] sm:$0xff]  ;;  %vm100_vm1 = vcmask 261120   ;;  %s500_s17 = smov 96   ;;  %s501_s24 = smov [#allocation8]  }
  0x39   :  { %366 = vmatprep.subr.bf16.mxu1 %v498_v0  ;;  %370 = vmatprep.mubr.msk.bf16.mxu1 %vm499_vm0, %v498_v0  ;;  %v81_v5 = vpack.c.bf16 %v80_v4, %v79_v3  ;;  %v341_v6 = vld [vmem:[%s617_s2] ss:$0 sm:$0xff]  ;;  %v388_v21 = vld [vmem:[%s620_s5 + $0x8] sm:$0xff]   ;;  %v168_v24 = vshrl.u32 %v167_v23, 7  ;;  %s328_s26 = sshll.u32 %s501_s24, 4  ;;  %s329_s26 = int_to_ptr.vmem [resolvable:$true] %s328_s26 }
  0x3a   :  { %359 = vmatpush3.bf16.msra.mxu0 %v385_v1  ;;  %v387_v20 = vld [vmem:[%s620_s5] sm:$0xff]   ;;  %p468_p11 = scmp.lt.s32.totalorder %s329_s26, %s329_s26 }
  0x3b   :  { %360 = vmatprep.subr.bf16.mxu0 %v498_v0  ;;  %367 = vmatpush3.bf16.msra.mxu1 %v387_v20  ;;  %v169_v25 = vadd.s32 8, %v168_v24  ;;  %v215_v27 = vsub.s32 1, %v168_v24  ;;  %v242_v28 = vsub.s32 2, %v168_v24  ;;  %v77_v29 = vld [vmem:[#allocation7] sm:$0x7]  ;;  %v179_v30 = vadd.s32 4294967294, %v168_v24 }
  0x3c   :  { %368 = vmatprep.subr.bf16.mxu1 %v498_v0  ;;  %v195_v31 = vsub.s32 0, %v168_v24  ;;  %vm176_vm2 = vcmp.lt.s32.totalorder %v168_v24, 2  ;;  %vm223_vm4 = vcmp.lt.s32.totalorder %v168_v24, 6  ;;  %v347_v57 = vld [vmem:[%s619_s4] ss:$0 sm:$0xff]  ;;  %s463_s4 = scalar_lea.vmem %s329_s26, 256 }
  0x3d   :  { %v227_v32 = vadd.s32 2, %v169_v25  ;;  %v216_v35 = vrot.slane %v77_v29, %v215_v27  ;;  %v243_v36 = vrot.slane %v77_v29, %v242_v28  ;;  %vm181_vm3 = vcmp.ge.s32.totalorder %v179_v30, 0  ;;  %v348_v1 = vld [vmem:[%s621_s6] ss:$0 sm:$0xff]  ;;  %p464_p10 = scmp.ne.s32.totalorder %s329_s26, %s463_s4  ;;  %p469_p12 = scmp.lt.s32.totalorder %s463_s4, %s463_s4 }
  0x3e   :  { %361 = vmatpush3.bf16.msra.mxu0 %v386_v2  ;;  %v196_v38 = vrot.slane %v77_v29, %v195_v31 }
  0x3f   :  { %369 = vmatpush3.bf16.msra.mxu1 %v388_v21  ;;  %vm231_vm5 = vcmp.lt.s32.totalorder %v227_v32, 16  ;;  %p470_p13 = por %p469_p12, %p468_p11 }
  0x41   :  { %363 = vmatmul.mubr.msk.bf16.vlgmr.msra.gmra.mrb[0].mxu0 %vm100_vm1, %v81_v5  ;;  %p471_p0 = pnand %p470_p13, %p464_p10 }
 0x114   :  { %v138_v7 = vpop.f32.mrb[0].mxu0 }
 0x115   :  { %v139_v8 = vadd.f32 %v341_v6, %v138_v7  ;;  %v364_v9 = vpop.f32.mrb[1].mxu0 }
 0x116   :  { %v141_v10 = vpop.f32.mrb[2].mxu0 }
 0x117   :  { %v345_v11 = vmul.f32 -1.442695, %v139_v8  ;;  %v142_v12 = vadd.f32 %v341_v6, %v141_v10  ;;  %v365_v13 = vpop.f32.mrb[3].mxu0 }
 0x119   :  { %389 = vpow2.f32 %v345_v11  ;;  %v346_v14 = vmul.f32 -1.442695, %v142_v12 }
 0x11b   :  { %391 = vpow2.f32 %v346_v14 }
 0x123   :  { %v390_v15 = vpop.eup %389 }
 0x124   :  { %v151_v16 = vadd.f32 1.0, %v390_v15 }
 0x125   :  { %v392_v17 = vpop.eup %391 }
 0x126   :  { %393 = vrcp.f32 %v151_v16  ;;  %v152_v18 = vadd.f32 1.0, %v392_v17 }
 0x128   :  { %395 = vrcp.f32 %v152_v18 }
 0x130   :  { %v394_v19 = vpop.eup %393 }
 0x131   :  { %159 = vrot.lane.b32.xlu0 %v394_v19, %s500_s17 }
 0x132   :  { %v396_v22 = vpop.eup %395 }
 0x135   :  { %161 = vrot.lane.b32.xlu0 %v396_v22, %s500_s17 }
 0x1a3   :  { %v160_v26 = vpop.permute.xlu0 %159 }
 0x1a4   :  { %v165_v33 = vmul.f32 %v160_v26, %v139_v8 }
 0x1a6   :  { %v174_v39 = vrot.slane %v165_v33, 6  ;;  %v221_v40 = vrot.slane %v165_v33, 2  ;;  %v217_v51 = vmul.f32 %v216_v35, %v165_v33 }
 0x1a7   :  { %v162_v34 = vpop.permute.xlu0 %161 }
 0x1a8   :  { %v166_v37 = vmul.f32 %v162_v34, %v142_v12 }
 0x1aa   :  { %v175_v41 = vrot.slane %v166_v37, 6  ;;  %v222_v42 = vrot.slane %v166_v37, 2  ;;  %v218_v45 = vmul.f32 %v216_v35, %v166_v37 }
 0x1ac   :  { %v177_v43 = vsel %vm176_vm2, %v174_v39, %v175_v41  ;;  %v178_v44 = vsel %vm176_vm2, %v175_v41, %v174_v39  ;;  %v225_v46 = vsel %vm223_vm4, %v222_v42, %v221_v40  ;;  %v224_v49 = vsel %vm223_vm4, %v221_v40, %v222_v42 }
 0x1ad   :  { %v191_v47 = vsel %vm181_vm3, %v178_v44, 0.0  ;;  %v198_v48 = vmul.f32 %v196_v38, %v177_v43  ;;  %v239_v50 = vsel %vm231_vm5, %v225_v46, 0.0  ;;  %v244_v56 = vmul.f32 %v243_v36, %v224_v49 }
 0x1ae   :  { %v197_v52 = vmul.f32 %v196_v38, %v191_v47  ;;  %v245_v53 = vmul.f32 %v243_v36, %v239_v50 }
 0x1af   :  { %v220_v54 = vadd.f32 %v218_v45, %v198_v48 }
 0x1b0   :  { %v219_v55 = vadd.f32 %v217_v51, %v197_v52 }
 0x1b1   :  { %v247_v58 = vadd.f32 %v245_v53, %v220_v54 }
 0x1b2   :  { %v246_v59 = vadd.f32 %v244_v56, %v219_v55 }
 0x1b3   :  { %v255_v60 = vadd.f32 %v347_v57, %v247_v58 }
 0x1b4   :  { %v254_v61 = vadd.f32 %v347_v57, %v246_v59 }
 0x1b5   :  { %v257_v62 = vmax.f32 %v255_v60, 0.0 }
 0x1b6   :  { %v256_v63 = vmax.f32 %v254_v61, 0.0 }
 0x1b8   :  { %v258_v0 = vpack.c.bf16 %v257_v62, %v256_v63 }
 0x1ba   :  { %371 = vmatmul.mubr.msk.bf16.vlgmr.msra.gmra.mrb[0].mxu1 %vm100_vm1, %v258_v0 }
 0x28d   :  { %v314_v2 = vpop.f32.mrb[0].mxu1 }
 0x28e   :  { %v315_v3 = vadd.f32 %v348_v1, %v314_v2  ;;  %v372_v4 = vpop.f32.mrb[1].mxu1 }
 0x28f   :  { %v317_v5 = vpop.f32.mrb[2].mxu1 }
 0x290   :  { %321 = vst.msk [vmem:[#allocation8] sm:$0xff] %vm100_vm1, %v315_v3  ;;  %v318_v6 = vadd.f32 %v348_v1, %v317_v5  ;;  %v373_v7 = vpop.f32.mrb[3].mxu1 }
 0x292   :  { %322 = vst.msk [vmem:[#allocation8 + $0x8] sm:$0xff] %vm100_vm1, %v318_v6 }
 0x293   :  { %474 = shalt.err (!%p471_p0)
}
 0x294   :  { %s475_s28 = scalar_lea.hbm %s622_s7, 256 }
 0x295   :  { %p476_p1 = scmp.ne.s32.totalorder %s622_s7, %s475_s28  ;;  %p479_p2 = scmp.lt.u32.totalorder %s475_s28, %s622_s7 }
 0x297   :  { %p481_p3 = pnand %p479_p2, %p476_p1 }
 0x299   :  { %484 = shalt.err (!%p481_p3)
}
 0x29a   :  { %334 = dma.vmem_to_hbm [thread:$0]  %s329_s26, 256, %s622_s7, [#allocation4], %s495_s1, %s495_s1, %s496_s25  }
 0x29b   :  { %489 = dma.done.wait [#allocation4], 256  }
 0x29c   :  { %490 = vsyncadd [#allocation4], 4294967040 }
 0x29d   :  { %338 = vsyncpa [#allocation3], 1 }
 0x29e   :  { %339 = vsyncpa [#allocation6], 1 }
 0x29f   :  { %340 = vsyncpa [#allocation4], 1 }

</bundles_post_ra>
